<compile_context>
chip_gen: v6e
topology: v6e:2x2x1
jax: 0.10.0
libtpu: 0.0.40
codegen_flags: <defaults>
</compile_context>

<pallas_src>
import jax
import jax.numpy as jnp
from jax.experimental import pallas as pl
from jax.experimental.pallas import tpu as pltpu


def mlp_kernel(xT_ref, w1_ref, b1_ref, w2_ref, b2_ref, w3_ref, b3_ref, o_ref):
    """Fused 3-layer MLP for one (4, tile_n) slab of the transposed batch."""
    # ---- Layer 1: 4 -> 64 on the MXU (K=4 is padded inside the MXU; it is idle
    # anyway, and this takes layer 1 off the VALU critical path).
    h1 = jnp.dot(w1_ref[...], xT_ref[...],
                 preferred_element_type=jnp.float32) + b1_ref[...]      # (64, T) f32
    h1 = jnp.maximum(h1, 0.0)

    # ---- Layer 2: 64 -> 128 on the MXU, f32 accumulate.
    h2 = jnp.dot(w2_ref[...], h1.astype(w2_ref.dtype),
                 preferred_element_type=jnp.float32) + b2_ref[...]      # (128, T) f32
    h2 = jnp.maximum(h2, 0.0)

    # ---- Layer 3: 128 -> 1 on the MXU (M=1 row output, stays lane-dense).
    y = jnp.dot(w3_ref[...], h2.astype(w3_ref.dtype),
                preferred_element_type=jnp.float32) + b3_ref[0]          # (1, T) f32
    o_ref[...] = y.astype(o_ref.dtype)                                   # unmasked store


def _choose_tile_n(n, max_tile=8192, min_grid_steps=2):
    """Largest lane-dense (multiple-of-128) tile dividing n, preferring at least
    `min_grid_steps` grid steps (2 for v5e/v6e, 4 for v7x's two TensorCores)."""
    assert n % 128 == 0
    candidates = [t for t in range(128, min(max_tile, n) + 1, 128) if n % t == 0]
    preferred = [t for t in candidates if n // t >= min_grid_steps]
    return max(preferred) if preferred else max(candidates)


def tetris_model_forward(x, params, *, tile_n=None, compute_dtype=jnp.float32,
                         inputs_transposed=False, min_grid_steps=2):
    """x: (N, 4) float32 (or (4, N) with inputs_transposed=True).
    Returns (N, 1) float32 — same semantics as the PyTorch Tetris_Model."""
    w1, b1, w2, b2, w3, b3 = params   # (64,4), (64,1), (128,64), (128,1), (1,128), (1,)

    # Layout plumbing: batch on the lane axis; pad batch to a multiple of 128 so
    # every tile is full-lane.  (If the producer already emits (4, N), pass
    # inputs_transposed=True and the extra XLA transpose dispatch is skipped.)
    xT = x if inputs_transposed else x.T                     # (4, n)
    n = xT.shape[1]
    n_pad = ((n + 127) // 128) * 128
    xT = xT.astype(compute_dtype)
    if n_pad != n:
        xT = jnp.pad(xT, ((0, 0), (0, n_pad - n)))

    if tile_n is None:
        tile_n = _choose_tile_n(n_pad, min_grid_steps=min_grid_steps)
    assert n_pad % tile_n == 0 and tile_n % 128 == 0
    grid = (n_pad // tile_n,)

    w1c = w1.astype(compute_dtype)
    w2c = w2.astype(compute_dtype)
    w3c = w3.astype(compute_dtype)

    resident = lambda i: (0, 0)   # weights/biases: one block, resident across grid steps

    out = pl.pallas_call(
        mlp_kernel,
        out_shape=jax.ShapeDtypeStruct((1, n_pad), jnp.float32),
        grid=grid,
        in_specs=[
            pl.BlockSpec((4, tile_n), lambda i: (0, i)),         # x tile (lane-dense)
            pl.BlockSpec((64, 4), resident),                     # W1
            pl.BlockSpec((64, 1), resident),                     # b1
            pl.BlockSpec((128, 64), resident),                   # W2
            pl.BlockSpec((128, 1), resident),                    # b2
            pl.BlockSpec((1, 128), resident),                    # W3 as a row (MXU)
            pl.BlockSpec(memory_space=pltpu.MemorySpace.SMEM),   # b3 scalar in SMEM
        ],
        out_specs=pl.BlockSpec((1, tile_n), lambda i: (0, i)),   # lane-dense output slab
        compiler_params=pltpu.CompilerParams(
            dimension_semantics=("parallel",),
            vmem_limit_bytes=32 * 1024 * 1024,
        ),
    )(xT, w1c, b1, w2c, b2, w3c, b3)

    return out.reshape(n_pad, 1)[:n]


def init_params(key):
    """Mirrors nn.Linear default init (uniform +-1/sqrt(fan_in)).
    W stored as (out, in); biases as (out, 1); W3 as a (1, 128) row; b3 as (1,)."""
    def linear(key, fan_in, fan_out):
        kw, kb = jax.random.split(key)
        bound = 1.0 / jnp.sqrt(fan_in)
        w = jax.random.uniform(kw, (fan_out, fan_in), jnp.float32, -bound, bound)
        b = jax.random.uniform(kb, (fan_out, 1), jnp.float32, -bound, bound)
        return w, b

    k1, k2, k3 = jax.random.split(key, 3)
    w1, b1 = linear(k1, 4, 64)          # (64, 4),   (64, 1)
    w2, b2 = linear(k2, 64, 128)        # (128, 64), (128, 1)
    w3, b3_col = linear(k3, 128, 1)     # (1, 128),  (1, 1)
    b3 = b3_col.reshape((1,))           # (1,) scalar -> SMEM
    return w1, b1, w2, b2, w3, b3


def reference_forward(x, params):
    w1, b1, w2, b2, w3, b3 = params
    h1 = jnp.maximum(x @ w1.T + b1[:, 0], 0.0)
    h2 = jnp.maximum(h1 @ w2.T + b2[:, 0], 0.0)
    return h2 @ w3.T + b3               # (N, 128) @ (128, 1) + (1,)


if __name__ == "__main__":
    key = jax.random.PRNGKey(0)
    kx, kp = jax.random.split(key)

    params = init_params(kp)

    # --- main test: batch of 256 board-feature vectors (two parallel grid steps).
    N = 256
    x = jax.random.normal(kx, (N, 4), dtype=jnp.float32)
    ref = reference_forward(x, params)

    # f32-operand path: matches the reference to near-f32 matmul precision.
    out_f32 = jax.block_until_ready(
        tetris_model_forward(x, params, compute_dtype=jnp.float32))
    assert out_f32.shape == (N, 1)
    assert jnp.allclose(out_f32, ref, atol=1e-4, rtol=1e-4)

    # bf16-operand path (single-pass MXU on v6e/v7x); accumulate stays f32.
    out_bf16 = jax.block_until_ready(
        tetris_model_forward(x, params, compute_dtype=jnp.bfloat16))
    assert out_bf16.shape == (N, 1)
    assert jnp.allclose(out_bf16, ref, atol=5e-2, rtol=5e-2)

    # --- ragged batch: exercises the pad-to-128 path (store stays unmasked).
    N2 = 200
    x2 = jax.random.normal(jax.random.PRNGKey(1), (N2, 4), dtype=jnp.float32)
    out2 = jax.block_until_ready(tetris_model_forward(x2, params))
    assert out2.shape == (N2, 1)
    assert jnp.allclose(out2, reference_forward(x2, params), atol=1e-4, rtol=1e-4)

    print("KERNEL_OK")
</pallas_src>

<mosaic_0001>
module attributes {stable_mosaic.version = 11 : i64} {
  func.func @mlp_kernel(%arg0: i32, %arg1: memref<4x128xf32, #tpu.memory_space<vmem>>, %arg2: memref<64x4xf32, #tpu.memory_space<vmem>>, %arg3: memref<64x1xf32, #tpu.memory_space<vmem>>, %arg4: memref<128x64xf32, #tpu.memory_space<vmem>>, %arg5: memref<128x1xf32, #tpu.memory_space<vmem>>, %arg6: memref<1x128xf32, #tpu.memory_space<vmem>>, %arg7: memref<1xf32, #tpu.memory_space<smem>>, %arg8: memref<1x128xf32, #tpu.memory_space<vmem>>) attributes {dimension_semantics = [#tpu.dimension_semantics<parallel>], iteration_bounds = array<i64: 2>, scalar_prefetch = 0 : i64, scratch_operands = 0 : i64, tpu.core_type = #tpu.core_type<tc>, window_params = [{transform_indices = @transform_0, window_bounds = array<i64: 4, 128>}, {pipeline_mode = #tpu.pipeline_mode<synchronous>, transform_indices = @transform_1, window_bounds = array<i64: 64, 4>}, {pipeline_mode = #tpu.pipeline_mode<synchronous>, transform_indices = @transform_2, window_bounds = array<i64: 64, 1>}, {pipeline_mode = #tpu.pipeline_mode<synchronous>, transform_indices = @transform_3, window_bounds = array<i64: 128, 64>}, {pipeline_mode = #tpu.pipeline_mode<synchronous>, transform_indices = @transform_4, window_bounds = array<i64: 128, 1>}, {pipeline_mode = #tpu.pipeline_mode<synchronous>, transform_indices = @transform_5, window_bounds = array<i64: 1, 128>}, {transform_indices = @transform_6, window_bounds = array<i64: 1>}, {transform_indices = @transform_7, window_bounds = array<i64: 1, 128>}]} {
    %c0 = arith.constant 0 : index
    %c0_0 = arith.constant 0 : index
    %0 = vector.load %arg2[%c0, %c0_0] : memref<64x4xf32, #tpu.memory_space<vmem>>, vector<64x4xf32>
    %c0_1 = arith.constant 0 : index
    %c0_2 = arith.constant 0 : index
    %1 = vector.load %arg1[%c0_1, %c0_2] : memref<4x128xf32, #tpu.memory_space<vmem>>, vector<4x128xf32>
    %cst = arith.constant dense<0.000000e+00> : vector<64x128xf32>
    %2 = tpu.matmul %0, %1, %cst {dimension_numbers = #tpu.dot_dimension_numbers<[1], [0], [0], [1], [0, 0, 1, 1], [], []>} : vector<64x4xf32>, vector<4x128xf32>, vector<64x128xf32> -> vector<64x128xf32>
    %c0_3 = arith.constant 0 : index
    %c0_4 = arith.constant 0 : index
    %3 = vector.load %arg3[%c0_3, %c0_4] : memref<64x1xf32, #tpu.memory_space<vmem>>, vector<64x1xf32>
    %4 = vector.broadcast %3 : vector<64x1xf32> to vector<64x128xf32>
    %5 = arith.addf %2, %4 : vector<64x128xf32>
    %cst_5 = arith.constant 0.000000e+00 : f32
    %6 = vector.broadcast %cst_5 : f32 to vector<64x128xf32>
    %7 = arith.maximumf %5, %6 : vector<64x128xf32>
    %c0_6 = arith.constant 0 : index
    %c0_7 = arith.constant 0 : index
    %8 = vector.load %arg4[%c0_6, %c0_7] : memref<128x64xf32, #tpu.memory_space<vmem>>, vector<128x64xf32>
    %cst_8 = arith.constant dense<0.000000e+00> : vector<128x128xf32>
    %9 = tpu.matmul %8, %7, %cst_8 {dimension_numbers = #tpu.dot_dimension_numbers<[1], [0], [0], [1], [0, 0, 1, 1], [], []>} : vector<128x64xf32>, vector<64x128xf32>, vector<128x128xf32> -> vector<128x128xf32>
    %c0_9 = arith.constant 0 : index
    %c0_10 = arith.constant 0 : index
    %10 = vector.load %arg5[%c0_9, %c0_10] : memref<128x1xf32, #tpu.memory_space<vmem>>, vector<128x1xf32>
    %11 = vector.broadcast %10 : vector<128x1xf32> to vector<128x128xf32>
    %12 = arith.addf %9, %11 : vector<128x128xf32>
    %cst_11 = arith.constant 0.000000e+00 : f32
    %13 = vector.broadcast %cst_11 : f32 to vector<128x128xf32>
    %14 = arith.maximumf %12, %13 : vector<128x128xf32>
    %c0_12 = arith.constant 0 : index
    %c0_13 = arith.constant 0 : index
    %15 = vector.load %arg6[%c0_12, %c0_13] : memref<1x128xf32, #tpu.memory_space<vmem>>, vector<1x128xf32>
    %cst_14 = arith.constant dense<0.000000e+00> : vector<1x128xf32>
    %16 = tpu.matmul %15, %14, %cst_14 {dimension_numbers = #tpu.dot_dimension_numbers<[1], [0], [0], [1], [0, 0, 1, 1], [], []>} : vector<1x128xf32>, vector<128x128xf32>, vector<1x128xf32> -> vector<1x128xf32>
    %c0_15 = arith.constant 0 : index
    %17 = memref.load %arg7[%c0_15] : memref<1xf32, #tpu.memory_space<smem>>
    %18 = vector.broadcast %17 : f32 to vector<1x128xf32>
    %19 = arith.addf %16, %18 : vector<1x128xf32>
    %c0_16 = arith.constant 0 : index
    %c0_17 = arith.constant 0 : index
    %20 = vector.load %arg8[%c0_16, %c0_17] : memref<1x128xf32, #tpu.memory_space<vmem>>, vector<1x128xf32>
    tpu.vector_store %arg8[%c0_16, %c0_17], %19 {strides = array<i32>} : memref<1x128xf32, #tpu.memory_space<vmem>>, vector<1x128xf32>,
    return
  }
  func.func @transform_0(%arg0: i32) -> (i32, i32) {
    %c0_i32 = arith.constant 0 : i32
    %c0_i32_0 = arith.constant 0 : i32
    return %c0_i32, %arg0 : i32, i32
  }
  func.func @transform_1(%arg0: i32) -> (i32, i32) {
    %c0_i32 = arith.constant 0 : i32
    %c0_i32_0 = arith.constant 0 : i32
    %c0_i32_1 = arith.constant 0 : i32
    return %c0_i32, %c0_i32_0 : i32, i32
  }
  func.func @transform_2(%arg0: i32) -> (i32, i32) {
    %c0_i32 = arith.constant 0 : i32
    %c0_i32_0 = arith.constant 0 : i32
    %c0_i32_1 = arith.constant 0 : i32
    return %c0_i32, %c0_i32_0 : i32, i32
  }
  func.func @transform_3(%arg0: i32) -> (i32, i32) {
    %c0_i32 = arith.constant 0 : i32
    %c0_i32_0 = arith.constant 0 : i32
    %c0_i32_1 = arith.constant 0 : i32
    return %c0_i32, %c0_i32_0 : i32, i32
  }
  func.func @transform_4(%arg0: i32) -> (i32, i32) {
    %c0_i32 = arith.constant 0 : i32
    %c0_i32_0 = arith.constant 0 : i32
    %c0_i32_1 = arith.constant 0 : i32
    return %c0_i32, %c0_i32_0 : i32, i32
  }
  func.func @transform_5(%arg0: i32) -> (i32, i32) {
    %c0_i32 = arith.constant 0 : i32
    %c0_i32_0 = arith.constant 0 : i32
    %c0_i32_1 = arith.constant 0 : i32
    return %c0_i32, %c0_i32_0 : i32, i32
  }
  func.func @transform_6(%arg0: i32) -> i32 {
    %c0_i32 = arith.constant 0 : i32
    %c0_i32_0 = arith.constant 0 : i32
    return %c0_i32 : i32
  }
  func.func @transform_7(%arg0: i32) -> (i32, i32) {
    %c0_i32 = arith.constant 0 : i32
    %c0_i32_0 = arith.constant 0 : i32
    return %c0_i32, %arg0 : i32, i32
  }
}

</mosaic_0001>

<bundles_post_ra>
// kernel: tpu_custom_call.1
= control target key start
LH: loop header
LB: loop body
LE: loop exit
PB: predicated region body
PF: predicated region fallthrough
CT: control target
= control target key end

     0   :  { %s1555_s0 = inlined_call_operand.vmem [shape: f32[4,256], index: 0, kind: input, shape index: {}]   ;;  %s1556_s1 = inlined_call_operand.vmem [shape: f32[64,4], index: 1, kind: input, shape index: {}]   ;;  %s1557_s2 = inlined_call_operand.vmem [shape: f32[64,1], index: 2, kind: input, shape index: {}]   ;;  %s1558_s3 = inlined_call_operand.vmem [shape: f32[128,64], index: 3, kind: input, shape index: {}]   ;;  %s1559_s4 = inlined_call_operand.vmem [shape: f32[128,1], index: 4, kind: input, shape index: {}]   ;;  %s1560_s5 = inlined_call_operand.vmem [shape: f32[1,128], index: 5, kind: input, shape index: {}]   ;;  %s1561_s6 = inlined_call_operand.<no memory space> [shape: f32[1], index: 6, kind: input, shape index: {}]   ;;  %s1562_s7 = inlined_call_operand.hbm [shape: f32[1,256], index: 7, kind: output, shape index: {}]  }
   0x1   :  { %12 = sst [smem:[#allocation2]] %s1561_s6 }
   0x2   :  { %13 = vsyncpa [#allocation4], 0 }
   0x3   :  { %15 = vsyncpa [#allocation4 + $0x1], 0  ;;  %s1262_s26 = smov 0   ;;  %s1264_s27 = smov 0  }
   0x4   :  { %s1266_s28 = smov 0   ;;  %s1268_s29 = smov 0  }
   0x5 LB: > { %s1283_s6 = sadd.s32 4294967295, %s1213_s29   ;;  %s937_s30 = sadd.s32 4294967294, %s1213_s29   ;;  %s1213_s29 = sphi %s1268_s29, %s1568_s29   ;;  %s1209_s28 = sphi %s1266_s28, %s1567_s28   ;;  %s1205_s27 = sphi %s1264_s27, %s1566_s27   ;;  %s1201_s26 = sphi %s1262_s26, %s1565_s26  }
   0x6   : > { %s1287_s8 = sadd.s32 1, %s1213_s29   ;;  %s180_s9 = sadd.s32 1, %s1209_s28 }
   0x7   : > { %s177_s10 = ssub.s32 %s1213_s29, %s1287_s8  ;;  %p190_p0 = scmp.ne.s32.totalorder %s1209_s28, %s1205_s27 }
   0x8   : > { %p178_p1 = scmp.eq.s32.totalorder %s177_s10, 0  ;;  %p191_p2 = scmp.eq.s32.totalorder %s1283_s6, 1 }
   0x9   : > { %p196_p3 = scmp.ne.s32.totalorder %s1205_s27, %s1201_s26  ;;  %p197_p4 = scmp.eq.s32.totalorder %s937_s30, 1 }
   0xa   : > { %s1298_s11 = scalar_select %p178_p1, %s1209_s28, %s180_s9  }
   0xb   : > { %p1300_p5 = por %p191_p2, %p190_p0  ;;  %p1304_p6 = por %p197_p4, %p196_p3 }
   0xc   : > { %p940_p7 = scmp.ge.s32.totalorder %s1213_s29, 1  ;;  %p240_p8 = scmp.lt.s32.totalorder %s1213_s29, 3 }
   0xe   : > { %p241_p9 = pnand %p940_p7, %p240_p8 }
   0xf   : > { %p270_p10 = scmp.lt.s32.totalorder (!%p241_p9), %s1283_s6, 1  ;;  %s796_s9 = sld [smem:[#allocation2]] (!%p241_p9) }
  0x10   : > { %244 = sbr.rel (%p241_p9) target bundleno = 717 (0x2cd), region = 48  ;;  %s268_s10 = sand.u32 (!%p241_p9), 1, %s1205_s27  }
  0x11   : > { %s967_s14 = sshll.u32 (!%p241_p9), %s1283_s6, 4  ;;  %s269_s15 = scalar_lea.vmem (!%p241_p9), [#allocation3], %s268_s10 }
  0x12   : > { %s1520_s19 = scalar_lea.hbm (!%p241_p9), %s1562_s7, %s967_s14  ;;  %s870_s20 = scalar_lea.sflag (!%p241_p9), [#allocation4], %s268_s10 }
  0x13   : > { %s1218_s22 = smov (!%p241_p9), [#allocation3]  }
  0x15   : > { %v274_v0 = vld [vmem:[%s1556_s1] sm:$0xff]  ;;  %vm331_vm0 = vcmask 31744   ;;  %s271_s16 = scalar_select %p270_p10, %s1283_s6, 1  ;;  %v1215_v1 = vmov 0   ;;  %v290_v2 = vld [vmem:[%s1557_s2 + $0x38] sm:$0xff]  ;;  %v288_v3 = vld [vmem:[%s1557_s2 + $0x28] sm:$0xff] }
  0x16   : > { %1022 = vmatprep.mubr.msk.f32.mxu0 %vm331_vm0, %v274_v0  ;;  %1151 = vset.pattern.permute.xlu0 %v1215_v1  ;;  %vm356_vm1 = vcmask 1043456   ;;  %v289_v4 = vld [vmem:[%s1557_s2 + $0x30] sm:$0xff]  ;;  %v287_v5 = vld [vmem:[%s1557_s2 + $0x20] sm:$0xff]  ;;  %v275_v7 = vld [vmem:[%s1556_s1 + $0x8] sm:$0xff]  ;;  %vm585_vm2 = vcmask 523264   ;;  %vm1217_vm3 = vmmov 0  }
  0x17   : > { %1152 = vset.pattern.permute.xlu1 %v1215_v1  ;;  %328 = vperm.xlu0 %1151, %v290_v2   ;;  %s941_s21 = sshll.u32 %s271_s16, 2  ;;  %v276_v8 = vld [vmem:[%s1556_s1 + $0x10] sm:$0xff]  ;;  %v286_v9 = vld [vmem:[%s1557_s2 + $0x18] sm:$0xff]  ;;  %v278_v12 = vld [vmem:[%s1556_s1 + $0x20] sm:$0xff]  ;;  %s882_s16 = sshll.u32 %s269_s15, 4  ;;  %s883_s16 = int_to_ptr.vmem [resolvable:$true] %s882_s16 }
  0x18   : > { %318 = vperm.xlu1 %1152, %v288_v3   ;;  %s273_s30 = scalar_lea.vmem %s1555_s0, %s941_s21  ;;  %v285_v10 = vld [vmem:[%s1557_s2 + $0x10] sm:$0xff]  ;;  %v277_v11 = vld [vmem:[%s1556_s1 + $0x18] sm:$0xff]  ;;  %v284_v13 = vld [vmem:[%s1557_s2 + $0x8] sm:$0xff]  ;;  %s1153_s21 = scalar_lea.vmem %s883_s16, 16 }
  0x19   : > { %v282_v6 = vld [vmem:[%s273_s30] sm:$0xf]  ;;  %v279_v15 = vld [vmem:[%s1556_s1 + $0x28] sm:$0xff]  ;;  %v280_v16 = vld [vmem:[%s1556_s1 + $0x30] sm:$0xff]  ;;  %p1154_p11 = scmp.ne.s32.totalorder %s883_s16, %s1153_s21  ;;  %s1157_s6 = sshll.u32 %s1218_s22, 4  ;;  %s1158_s6 = int_to_ptr.vmem [resolvable:$false] %s1157_s6 }
  0x1a   : > { %1020 = vmatprep.subr.msk.mxu0 %vm356_vm1, %v282_v6  ;;  %v283_v14 = vld [vmem:[%s1557_s2] sm:$0xff]  ;;  %v504_v17 = vld [vmem:[%s1559_s4 + $0x78] sm:$0xff]  ;;  %v503_v18 = vld [vmem:[%s1559_s4 + $0x70] sm:$0xff]  ;;  %s1159_s23 = scalar_lea.vmem %s1158_s6, 32  ;;  %p1160_p0 = scmp.lt.s32.totalorder %s883_s16, %s1158_s6 }
  0x1b   : > { %323 = vperm.xlu0 %1151, %v289_v4   ;;  %1021 = vmatpush3.msk.msra.mxu0 %vm356_vm1, %v282_v6  ;;  %v281_v19 = vld [vmem:[%s1556_s1 + $0x38] sm:$0xff]  ;;  %v502_v20 = vld [vmem:[%s1559_s4 + $0x68] sm:$0xff]  ;;  %v501_v21 = vld [vmem:[%s1559_s4 + $0x60] sm:$0xff]  ;;  %p1155_p12 = pnand %p1154_p11, %p1300_p5  ;;  %p1161_p1 = scmp.lt.s32.totalorder %s1159_s23, %s1153_s21 }
  0x1c   : > { %313 = vperm.xlu1 %1152, %v287_v5   ;;  %1023 = vmatmul.mubr.msk.f32.vlgmr.msra.gmra.mxu0 %vm331_vm0, %v275_v7  ;;  %v500_v22 = vld [vmem:[%s1559_s4 + $0x58] sm:$0xff]  ;;  %v499_v23 = vld [vmem:[%s1559_s4 + $0x50] sm:$0xff]  ;;  %v498_v24 = vld [vmem:[%s1559_s4 + $0x48] sm:$0xff] }
  0x1d   : > { %1025 = vmatprep.mubr.msk.f32.mxu0 %vm331_vm0, %v276_v8  ;;  %v497_v25 = vld [vmem:[%s1559_s4 + $0x40] sm:$0xff]  ;;  %v496_v26 = vld [vmem:[%s1559_s4 + $0x38] sm:$0xff]  ;;  %v495_v27 = vld [vmem:[%s1559_s4 + $0x30] sm:$0xff]  ;;  %p1156_p13 = pneg %p1155_p12  ;;  %p1162_p2 = por %p1161_p1, %p1160_p0 }
  0x1e   : > { %v494_v28 = vld [vmem:[%s1559_s4 + $0x28] sm:$0xff]  ;;  %v493_v29 = vld [vmem:[%s1559_s4 + $0x20] sm:$0xff]  ;;  %v492_v30 = vld [vmem:[%s1559_s4 + $0x18] sm:$0xff] }
  0x1f   : > { %308 = vperm.xlu0 %1151, %v286_v9   ;;  %v491_v31 = vld [vmem:[%s1559_s4 + $0x10] sm:$0xff]  ;;  %v490_v32 = vld [vmem:[%s1559_s4 + $0x8] sm:$0xff]  ;;  %v489_v33 = vld [vmem:[%s1559_s4] sm:$0xff]  ;;  %p1163_p3 = pnand %p1162_p2, %p1156_p13 }
  0x20   : > { %303 = vperm.xlu1 %1152, %v285_v10   ;;  %1026 = vmatmul.mubr.msk.f32.gmra.mxu0 %vm331_vm0, %v277_v11  ;;  %v473_v34 = vld [vmem:[%s1558_s3] sm:$0xff]  ;;  %v474_v3 = vld [vmem:[%s1558_s3 + $0x8] sm:$0xff]  ;;  %v475_v4 = vld [vmem:[%s1558_s3 + $0x10] sm:$0xff] }
  0x21   : > { %1028 = vmatprep.mubr.msk.f32.mxu0 %vm331_vm0, %v278_v12  ;;  %1050 = vmatprep.mubr.msk.f32.mxu1 %vm585_vm2, %v473_v34  ;;  %v476_v5 = vld [vmem:[%s1558_s3 + $0x18] sm:$0xff]  ;;  %v477_v6 = vld [vmem:[%s1558_s3 + $0x20] sm:$0xff]  ;;  %v478_v7 = vld [vmem:[%s1558_s3 + $0x28] sm:$0xff] }
  0x22   : > { %v479_v8 = vld [vmem:[%s1558_s3 + $0x30] sm:$0xff]  ;;  %v480_v9 = vld [vmem:[%s1558_s3 + $0x38] sm:$0xff]  ;;  %v481_v10 = vld [vmem:[%s1558_s3 + $0x40] sm:$0xff] }
  0x23   : > { %298 = vperm.xlu0 %1151, %v284_v13   ;;  %v482_v11 = vld [vmem:[%s1558_s3 + $0x48] sm:$0xff]  ;;  %v483_v12 = vld [vmem:[%s1558_s3 + $0x50] sm:$0xff]  ;;  %v484_v13 = vld [vmem:[%s1558_s3 + $0x58] sm:$0xff] }
  0x24   : > { %293 = vperm.xlu1 %1152, %v283_v14   ;;  %1029 = vmatmul.mubr.msk.f32.gmra.mxu0 %vm331_vm0, %v279_v15  ;;  %v485_v14 = vld [vmem:[%s1558_s3 + $0x60] sm:$0xff]  ;;  %v486_v15 = vld [vmem:[%s1558_s3 + $0x68] sm:$0xff] }
  0x25   : > { %1031 = vmatprep.mubr.msk.f32.mxu0 %vm331_vm0, %v280_v16  ;;  %v487_v16 = vld [vmem:[%s1558_s3 + $0x70] sm:$0xff] }
  0x27   : > { %582 = vperm.xlu0 %1151, %v504_v17   ;;  %v488_v17 = vld [vmem:[%s1558_s3 + $0x78] sm:$0xff] }
  0x28   : > { %577 = vperm.xlu1 %1152, %v503_v18   ;;  %1032 = vmatmul.mubr.msk.f32.gmra.mxu0 %vm331_vm0, %v281_v19  ;;  %v1216_v18 = vmov 0.0  }
  0x29   : > { %1074 = vmatprep.subr.mxu0 %v1216_v18  ;;  %1106 = vmatprep.mubr.msk.f32.mxu0 %vm1217_vm3, %v1216_v18 }
  0x2b   : > { %572 = vperm.xlu0 %1151, %v502_v20  }
  0x2c   : > { %567 = vperm.xlu1 %1152, %v501_v21  }
  0x2f   : > { %562 = vperm.xlu0 %1151, %v500_v22  }
  0x30   : > { %557 = vperm.xlu1 %1152, %v499_v23  }
  0x33   : > { %552 = vperm.xlu0 %1151, %v498_v24  }
  0x34   : > { %547 = vperm.xlu1 %1152, %v497_v25  }
  0x37   : > { %542 = vperm.xlu0 %1151, %v496_v26  }
  0x38   : > { %537 = vperm.xlu1 %1152, %v495_v27  }
  0x3b   : > { %532 = vperm.xlu0 %1151, %v494_v28  }
  0x3c   : > { %527 = vperm.xlu1 %1152, %v493_v29  }
  0x3f   : > { %522 = vperm.xlu0 %1151, %v492_v30  }
  0x40   : > { %517 = vperm.xlu1 %1152, %v491_v31  }
  0x43   : > { %512 = vperm.xlu0 %1151, %v490_v32  }
  0x44   : > { %507 = vperm.xlu1 %1152, %v489_v33  }
  0x92   : > { %v329_v37 = vpop.permute.xlu0 %328 }
  0x93   : > { %v319_v39 = vpop.permute.xlu1 %318 }
  0x96   : > { %v324_v42 = vpop.permute.xlu0 %323 }
  0x97   : > { %v314_v44 = vpop.permute.xlu1 %313 }
  0x9a   : > { %v309_v51 = vpop.permute.xlu0 %308 }
  0x9b   : > { %v304_v54 = vpop.permute.xlu1 %303 }
  0x9e   : > { %v299_v59 = vpop.permute.xlu0 %298 }
  0x9f   : > { %v294_v62 = vpop.permute.xlu1 %293 }
  0xa2   : > { %v583_v25 = vpop.permute.xlu0 %582 }
  0xa3   : > { %v578_v27 = vpop.permute.xlu1 %577 }
  0xa6   : > { %v573_v30 = vpop.permute.xlu0 %572 }
  0xa7   : > { %v568_v32 = vpop.permute.xlu1 %567 }
  0xdc   : > { %v1024_v35 = vpop.f32.mrf.mxu0 }
  0xdd   : > { %v432_v60 = vadd.f32 %v1024_v35, %v299_v59  ;;  %v563_v35 = vpop.permute.xlu0 %562 }
  0xde   : > { %v426_v36 = vpop.f32.mrf.mxu0 }
  0xdf   : > { %v427_v63 = vadd.f32 %v426_v36, %v294_v62  ;;  %v466_v1 = vmax.f32 %v432_v60, 0.0 }
  0xe0   : > { %v1027_v38 = vpop.f32.mrf.mxu0 }
  0xe1   : > { %v442_v55 = vadd.f32 %v1027_v38, %v309_v51  ;;  %v465_v2 = vmax.f32 %v427_v63, 0.0 }
  0xe2   : > { %v436_v40 = vpop.f32.mrf.mxu0 }
  0xe3   : > { %v437_v57 = vadd.f32 %v436_v40, %v304_v54  ;;  %v468_v61 = vmax.f32 %v442_v55, 0.0 }
  0xe4   : > { %v1030_v41 = vpop.f32.mrf.mxu0 }
  0xe5   : > { %v452_v48 = vadd.f32 %v1030_v41, %v319_v39  ;;  %v467_v0 = vmax.f32 %v437_v57, 0.0  ;;  %v553_v41 = vpop.permute.xlu0 %552 }
  0xe6   : > { %v446_v43 = vpop.f32.mrf.mxu0 }
  0xe7   : > { %v447_v52 = vadd.f32 %v446_v43, %v314_v44  ;;  %v470_v56 = vmax.f32 %v452_v48, 0.0 }
  0xe8   : > { %v1033_v45 = vpop.f32.mrf.mxu0 }
  0xe9   : > { %v462_v46 = vadd.f32 %v1033_v45, %v329_v37  ;;  %v469_v58 = vmax.f32 %v447_v52, 0.0  ;;  %v558_v37 = vpop.permute.xlu1 %557  ;;  %v543_v51 = vpop.permute.xlu0 %542 }
  0xea   : > { %v456_v47 = vpop.f32.mrf.mxu0 }
  0xeb   : > { %v472_v49 = vmax.f32 %v462_v46, 0.0  ;;  %v457_v50 = vadd.f32 %v456_v47, %v324_v42 }
  0xed   : > { %v471_v53 = vmax.f32 %v457_v50, 0.0  ;;  %1034 = vmatprep.subr.mxu1 %v472_v49  ;;  %v548_v46 = vpop.permute.xlu1 %547  ;;  %v533_v59 = vpop.permute.xlu0 %532 }
  0xee   : > { %1035 = vmatpush3.msra.mxu1 %v472_v49 }
  0xef   : > { %1036 = vmatprep.subr.mxu1 %v471_v53 }
  0xf0   : > { %1037 = vmatpush3.msra.mxu1 %v471_v53 }
  0xf1   : > { %1038 = vmatprep.subr.mxu1 %v470_v56  ;;  %v538_v54 = vpop.permute.xlu1 %537 }
  0xf2   : > { %1039 = vmatpush3.msra.mxu1 %v470_v56 }
  0xf3   : > { %1040 = vmatprep.subr.mxu1 %v469_v58 }
  0xf4   : > { %1041 = vmatpush3.msra.mxu1 %v469_v58 }
  0xf5   : > { %1042 = vmatprep.subr.mxu1 %v468_v61  ;;  %v528_v62 = vpop.permute.xlu1 %527 }
  0xf6   : > { %1043 = vmatpush3.msra.mxu1 %v468_v61 }
  0xf7   : > { %1044 = vmatprep.subr.mxu1 %v467_v0 }
  0xf8   : > { %1045 = vmatpush3.msra.mxu1 %v467_v0 }
  0xf9   : > { %1046 = vmatprep.subr.mxu1 %v466_v1 }
  0xfa   : > { %1047 = vmatpush3.msra.mxu1 %v466_v1 }
  0xfb   : > { %1048 = vmatprep.subr.mxu1 %v465_v2 }
  0xfc   : > { %1049 = vmatpush3.msra.mxu1 %v465_v2 }
  0xfd   : > { %1051 = vmatmul.mubr.msk.f32.vlgmr.msra.gmra.mxu1 %vm585_vm2, %v474_v3  ;;  %v523_v3 = vpop.permute.xlu0 %522 }
  0xfe   : > { %1053 = vmatprep.mubr.msk.f32.mxu1 %vm585_vm2, %v475_v4 }
 0x101   : > { %1054 = vmatmul.mubr.msk.f32.gmra.mxu1 %vm585_vm2, %v476_v5 }
 0x102   : > { %1056 = vmatprep.mubr.msk.f32.mxu1 %vm585_vm2, %v477_v6  ;;  %v518_v6 = vpop.permute.xlu1 %517 }
 0x105   : > { %1057 = vmatmul.mubr.msk.f32.gmra.mxu1 %vm585_vm2, %v478_v7 }
 0x106   : > { %1059 = vmatprep.mubr.msk.f32.mxu1 %vm585_vm2, %v479_v8 }
 0x109   : > { %1060 = vmatmul.mubr.msk.f32.gmra.mxu1 %vm585_vm2, %v480_v9 }
 0x10a   : > { %1062 = vmatprep.mubr.msk.f32.mxu1 %vm585_vm2, %v481_v10 }
 0x10d   : > { %1063 = vmatmul.mubr.msk.f32.gmra.mxu1 %vm585_vm2, %v482_v11  ;;  %v513_v11 = vpop.permute.xlu0 %512 }
 0x10e   : > { %1065 = vmatprep.mubr.msk.f32.mxu1 %vm585_vm2, %v483_v12 }
 0x111   : > { %1066 = vmatmul.mubr.msk.f32.gmra.mxu1 %vm585_vm2, %v484_v13 }
 0x112   : > { %1068 = vmatprep.mubr.msk.f32.mxu1 %vm585_vm2, %v485_v14  ;;  %v508_v14 = vpop.permute.xlu1 %507 }
 0x115   : > { %1069 = vmatmul.mubr.msk.f32.gmra.mxu1 %vm585_vm2, %v486_v15 }
 0x116   : > { %1071 = vmatprep.mubr.msk.f32.mxu1 %vm585_vm2, %v487_v16 }
 0x119   : > { %1072 = vmatmul.mubr.msk.f32.gmra.mxu1 %vm585_vm2, %v488_v17 }
 0x1bd   : > { %v1485_v19 = vpop.f32.mrf.mxu1 }
 0x1be   : > { %v706_v12 = vadd.f32 %v1485_v19, %v513_v11  ;;  %v795_v19 = vld [vmem:[%s1560_s5] sm:$0x1] }
 0x1bf   : > { %v1487_v20 = vpop.f32.mrf.mxu1 }
 0x1c0   : > { %v701_v15 = vadd.f32 %v1487_v20, %v508_v14  ;;  %v780_v17 = vmax.f32 %v706_v12, 0.0  ;;  %v797_v20 = vstv %s796_s9 }
 0x1c1   : > { %v1489_v21 = vpop.f32.mrf.mxu1 }
 0x1c2   : > { %v716_v7 = vadd.f32 %v1489_v21, %v523_v3  ;;  %v779_v21 = vmax.f32 %v701_v15, 0.0 }
 0x1c3   : > { %v1491_v22 = vpop.f32.mrf.mxu1 }
 0x1c4   : > { %v711_v9 = vadd.f32 %v1491_v22, %v518_v6  ;;  %v782_v13 = vmax.f32 %v716_v7, 0.0 }
 0x1c5   : > { %v1058_v23 = vpop.f32.mrf.mxu1 }
 0x1c6   : > { %v726_v1 = vadd.f32 %v1058_v23, %v533_v59  ;;  %v781_v16 = vmax.f32 %v711_v9, 0.0 }
 0x1c7   : > { %v720_v24 = vpop.f32.mrf.mxu1 }
 0x1c8   : > { %v721_v4 = vadd.f32 %v720_v24, %v528_v62  ;;  %v784_v8 = vmax.f32 %v726_v1, 0.0 }
 0x1c9   : > { %v1061_v26 = vpop.f32.mrf.mxu1 }
 0x1ca   : > { %v736_v60 = vadd.f32 %v1061_v26, %v543_v51  ;;  %v783_v10 = vmax.f32 %v721_v4, 0.0 }
 0x1cb   : > { %v730_v28 = vpop.f32.mrf.mxu1 }
 0x1cc   : > { %v731_v63 = vadd.f32 %v730_v28, %v538_v54  ;;  %v786_v2 = vmax.f32 %v736_v60, 0.0 }
 0x1cd   : > { %v1064_v29 = vpop.f32.mrf.mxu1 }
 0x1ce   : > { %v746_v55 = vadd.f32 %v1064_v29, %v553_v41  ;;  %v785_v5 = vmax.f32 %v731_v63, 0.0 }
 0x1cf   : > { %v740_v31 = vpop.f32.mrf.mxu1 }
 0x1d0   : > { %v741_v57 = vadd.f32 %v740_v31, %v548_v46  ;;  %v788_v61 = vmax.f32 %v746_v55, 0.0 }
 0x1d1   : > { %v1067_v33 = vpop.f32.mrf.mxu1 }
 0x1d2   : > { %v756_v49 = vadd.f32 %v1067_v33, %v563_v35  ;;  %v787_v0 = vmax.f32 %v741_v57, 0.0 }
 0x1d3   : > { %v750_v34 = vpop.f32.mrf.mxu1 }
 0x1d4   : > { %v751_v52 = vadd.f32 %v750_v34, %v558_v37  ;;  %v790_v56 = vmax.f32 %v756_v49, 0.0 }
 0x1d5   : > { %v1070_v36 = vpop.f32.mrf.mxu1 }
 0x1d6   : > { %v766_v43 = vadd.f32 %v1070_v36, %v573_v30  ;;  %v789_v58 = vmax.f32 %v751_v52, 0.0 }
 0x1d7   : > { %v760_v38 = vpop.f32.mrf.mxu1 }
 0x1d8   : > { %v761_v47 = vadd.f32 %v760_v38, %v568_v32  ;;  %v792_v50 = vmax.f32 %v766_v43, 0.0 }
 0x1d9   : > { %v1073_v39 = vpop.f32.mrf.mxu1 }
 0x1da   : > { %v776_v40 = vadd.f32 %v1073_v39, %v583_v25  ;;  %v791_v53 = vmax.f32 %v761_v47, 0.0 }
 0x1db   : > { %v770_v42 = vpop.f32.mrf.mxu1 }
 0x1dc   : > { %v794_v44 = vmax.f32 %v776_v40, 0.0  ;;  %v771_v45 = vadd.f32 %v770_v42, %v578_v27 }
 0x1de   : > { %v793_v48 = vmax.f32 %v771_v45, 0.0  ;;  %1075 = vmatpush3.msra.mxu0 %v794_v44 }
 0x1df   : > { %1076 = vmatprep.subr.mxu0 %v1216_v18 }
 0x1e0   : > { %1077 = vmatpush3.msra.mxu0 %v793_v48 }
 0x1e1   : > { %1078 = vmatprep.subr.mxu0 %v1216_v18 }
 0x1e2   : > { %1079 = vmatpush3.msra.mxu0 %v792_v50 }
 0x1e3   : > { %1080 = vmatprep.subr.mxu0 %v1216_v18 }
 0x1e4   : > { %1081 = vmatpush3.msra.mxu0 %v791_v53 }
 0x1e5   : > { %1082 = vmatprep.subr.mxu0 %v1216_v18 }
 0x1e6   : > { %1083 = vmatpush3.msra.mxu0 %v790_v56 }
 0x1e7   : > { %1084 = vmatprep.subr.mxu0 %v1216_v18 }
 0x1e8   : > { %1085 = vmatpush3.msra.mxu0 %v789_v58 }
 0x1e9   : > { %1086 = vmatprep.subr.mxu0 %v1216_v18 }
 0x1ea   : > { %1087 = vmatpush3.msra.mxu0 %v788_v61 }
 0x1eb   : > { %1088 = vmatprep.subr.mxu0 %v1216_v18 }
 0x1ec   : > { %1089 = vmatpush3.msra.mxu0 %v787_v0 }
 0x1ed   : > { %1090 = vmatprep.subr.mxu0 %v1216_v18 }
 0x1ee   : > { %1091 = vmatpush3.msra.mxu0 %v786_v2 }
 0x1ef   : > { %1092 = vmatprep.subr.mxu0 %v1216_v18 }
 0x1f0   : > { %1093 = vmatpush3.msra.mxu0 %v785_v5 }
 0x1f1   : > { %1094 = vmatprep.subr.mxu0 %v1216_v18 }
 0x1f2   : > { %1095 = vmatpush3.msra.mxu0 %v784_v8 }
 0x1f3   : > { %1096 = vmatprep.subr.mxu0 %v1216_v18 }
 0x1f4   : > { %1097 = vmatpush3.msra.mxu0 %v783_v10 }
 0x1f5   : > { %1098 = vmatprep.subr.mxu0 %v1216_v18 }
 0x1f6   : > { %1099 = vmatpush3.msra.mxu0 %v782_v13 }
 0x1f7   : > { %1100 = vmatprep.subr.mxu0 %v1216_v18 }
 0x1f8   : > { %1101 = vmatpush3.msra.mxu0 %v781_v16 }
 0x1f9   : > { %1102 = vmatprep.subr.mxu0 %v1216_v18 }
 0x1fa   : > { %1103 = vmatpush3.msra.mxu0 %v780_v17 }
 0x1fb   : > { %1104 = vmatprep.subr.mxu0 %v1216_v18 }
 0x1fc   : > { %1105 = vmatpush3.msra.mxu0 %v779_v21 }
 0x1fd   : > { %1107 = vmatmul.mubr.f32.vlgmr.msra.gmra.mxu0 %v795_v19 }
 0x2bd   : > { %v864_v22 = vpop.f32.mrf.mxu0 }
 0x2be   : > { %v865_v23 = vadd.f32 %v864_v22, %v797_v20 }
 0x2bf   : > { %v1108_v24 = vpop.f32.mrf.mxu0 }
 0x2c0   : > { %868 = vst [vmem:[%s269_s15] sm:$0x1] %v865_v23 }
 0x2c1   : > { %1166 = shalt.err (!%p1163_p3)
}
 0x2c2   : > { %s1167_s24 = scalar_lea.hbm %s1520_s19, 16  ;;  %s1171_s9 = scalar_lea.hbm %s1562_s7, 32 }
 0x2c3   : > { %p1168_p4 = scmp.ne.s32.totalorder %s1520_s19, %s1167_s24  ;;  %p1172_p9 = scmp.lt.s32.totalorder %s1520_s19, %s1562_s7 }
 0x2c4   : > { %p1173_p10 = scmp.lt.s32.totalorder %s1171_s9, %s1167_s24 }
 0x2c5   : > { %p1169_p7 = pnand %p1168_p4, %p1300_p5 }
 0x2c6   : > { %p1174_p11 = por %p1173_p10, %p1172_p9 }
 0x2c7   : > { %p1170_p8 = pneg %p1169_p7 }
 0x2c9   : > { %p1175_p12 = pnand %p1174_p11, %p1170_p8 }
 0x2cb   : > { %1178 = shalt.err (!%p1175_p12)
}
 0x2cc   : > { %1109 = dma.vmem_to_hbm [thread:$0]  (%p1300_p5), %s883_s16, 16, %s1520_s19, %s870_s20  }
 0x2cd PF: > { %p1115_p13 = scmp.ge.s32.totalorder %s1213_s29, 2  ;;  %s894_s15 = sand.u32 1, %s1201_s26  }
 0x2ce   : > { %s895_s17 = scalar_lea.sflag [#allocation4], %s894_s15 }
 0x2cf   : > { %p1112_p0 = pnand %p1115_p13, %p1304_p6 }
 0x2d1   : > { %p1113_p1 = pneg %p1112_p0 }
 0x2d3   : > { %1196 = dma.done.wait (%p1113_p1), %s895_s17, 16  }
 0x2d4   : > { %1198 = vsyncadd (%p1113_p1), %s895_s17, 4294967280  ;;  %p18_p2 = scmp.ge.s32.totalorder %s1287_s8, 4   ;;  %s1565_s26 = smov %s1205_s27 }
 0x2d5   : > { %s1566_s27 = smov %s1209_s28  ;;  %s1567_s28 = smov %s1298_s11 }
 0x2d6   : > { %s1568_s29 = smov %s1287_s8  ;;  %20 = sbr.rel (!%p18_p2) target bundleno = 5 (0x5), region = 83 }
 0x2db   :  { %899 = vsyncpa [#allocation4], 1 }
 0x2dc   :  { %901 = vsyncpa [#allocation4 + $0x1], 1 }

</bundles_post_ra>
